<compile_context>
chip_gen: v5e
topology: v5e:2x2
jax: 0.10.0
libtpu: 0.0.40
codegen_flags: <defaults>
</compile_context>

<pallas_src>
import jax
import jax.numpy as jnp
from jax.experimental import pallas as pl
from jax.experimental.pallas import tpu as pltpu

# ----------------------------- problem sizes --------------------------------
BATCH = 4
INPUT_DIM = 16
HIDDEN_DIM = 32
OUTPUT_DIM = 8
NUM_READ_HEADS = 2
MEM_HEI = 8
MEM_WID = 16
READ_VEC_DIM = NUM_READ_HEADS * MEM_WID  # 32
CLIP_VALUE = 20.0
SLAB_LANES = 128                         # lane-dense output slab width
# TODO(synk): num_write_heads exists in the module args but the base class has no
# concrete write-head semantics; memory is treated as read-only state here.


def circuit_kernel(
    x_ref,        # (B, INPUT_DIM)                  x_t (per-step block)
    rv0_ref,      # (B, READ_VEC_DIM)               initial read vector (t==0 only)
    mem_ref,      # (MEM_HEI, MEM_WID)              external memory (resident)
    mem_t_ref,    # (MEM_WID, MEM_HEI)              pre-transposed memory (resident)
    w_c_ref,      # (INPUT_DIM+READ_VEC_DIM, HID)   fused controller weight (resident)
    b_c_ref,      # (1, HIDDEN_DIM)
    w_k_ref,      # (HIDDEN_DIM, READ_VEC_DIM)      accessor key projection
    b_k_ref,      # (1, READ_VEC_DIM)
    w_o_ref,      # (HID+READ_VEC_DIM, OUTPUT_DIM)  fused hid_to_out weight
    b_o_ref,      # (1, OUTPUT_DIM)
    slab_ref,     # (B, 128) out: lanes [0:8]=out_t, [8:40]=read_vec_t
    rv_state,     # VMEM (B, READ_VEC_DIM) carried read-vector state
):
    t = pl.program_id(0)

    @pl.when(t == 0)
    def _():
        rv_state[...] = rv0_ref[...]

    x = x_ref[...]                      # (B, INPUT_DIM)
    rv = rv_state[...]                  # (B, READ_VEC_DIM)
    mem = mem_ref[...]                  # (H, W)
    mem_t = mem_t_ref[...]              # (W, H)

    # ---- controller (abstract in base class; feed-forward tanh stand-in) ----
    # TODO(synk): Circuit.controller is abstract (LSTM in subclasses); feed-forward
    # tanh controller used here.  Single fused matmul over [x, rv].
    cin = jnp.concatenate([x, rv], axis=-1)                         # (B, 48)
    hidden = jnp.tanh(
        jnp.dot(cin, w_c_ref[...], preferred_element_type=jnp.float32)
        + b_c_ref[...]
    )                                                               # (B, HID)

    # ---- accessor (abstract in base class; content-based read stand-in) ----
    # TODO(synk): Circuit.accessor is abstract (write+read heads over external
    # memory); implemented as content-based read addressing only.
    keys = (
        jnp.dot(hidden, w_k_ref[...], preferred_element_type=jnp.float32)
        + b_k_ref[...]
    )                                                               # (B, R*W)

    # Batch both heads along the sublane axis -> (B*R, W) = (8, 16):
    # one similarity matmul, one softmax, one read matmul.
    keys_bh = jnp.concatenate(
        [keys[:, h * MEM_WID:(h + 1) * MEM_WID] for h in range(NUM_READ_HEADS)],
        axis=0,
    )                                                               # (B*R, W)
    sim = jnp.dot(keys_bh, mem_t, preferred_element_type=jnp.float32)  # (B*R, H)
    sim = sim - jnp.max(sim, axis=-1, keepdims=True)
    p = jnp.exp(sim)
    w = p * pl.reciprocal(jnp.sum(p, axis=-1, keepdims=True), approx=True)
    reads_bh = jnp.dot(w, mem, preferred_element_type=jnp.float32)  # (B*R, W)
    read_vec = jnp.concatenate(
        [reads_bh[h * BATCH:(h + 1) * BATCH, :] for h in range(NUM_READ_HEADS)],
        axis=-1,
    )                                                               # (B, R*W)
    rv_state[...] = read_vec            # carry state to next step (stays in VMEM)

    # ---- hid_to_out + clamp + sigmoid (single fused matmul over [hidden, rv]) ----
    hr = jnp.concatenate([hidden, read_vec], axis=-1)               # (B, 64)
    logits = (
        jnp.dot(hr, w_o_ref[...], preferred_element_type=jnp.float32)
        + b_o_ref[...]
    )                                                               # (B, OUT)
    logits = jnp.clip(logits, -CLIP_VALUE, CLIP_VALUE)
    out = jax.nn.sigmoid(logits)

    # ---- lane-dense writeback: one (B, 128) slab per step ----
    slab_ref[...] = jnp.zeros_like(slab_ref)
    slab_ref[:, 0:OUTPUT_DIM] = out
    slab_ref[:, OUTPUT_DIM:OUTPUT_DIM + READ_VEC_DIM] = read_vec


def _fuse_params(params):
    w_ci, w_cr, b_c, w_k, b_k, w_oh, w_or, b_o = params
    w_c = jnp.concatenate([w_ci, w_cr], axis=0)   # (48, 32)
    w_o = jnp.concatenate([w_oh, w_or], axis=0)   # (64, 8)
    return w_c, b_c, w_k, b_k, w_o, b_o


@jax.jit
def circuit_forward_seq(x_seq, read_vec0, memory, params):
    """Run T recurrent Circuit.forward steps inside one Pallas kernel.

    Returns (outs, new_read_vec): outs is (T, B, OUTPUT_DIM) where outs[t] is the
    module's per-step output; new_read_vec is the final (B, READ_VEC_DIM) state.
    """
    T = x_seq.shape[0]
    w_c, b_c, w_k, b_k, w_o, b_o = _fuse_params(params)
    mem_t = memory.T                                   # transposed once, outside kernel

    grid_spec = pltpu.PrefetchScalarGridSpec(
        num_scalar_prefetch=0,
        grid=(T,),
        in_specs=[
            # x_t: only this block is DMA'd per step
            pl.BlockSpec((None, BATCH, INPUT_DIM), lambda t: (t, 0, 0)),
            # everything below: constant block index -> fetched once, VMEM-resident
            pl.BlockSpec((BATCH, READ_VEC_DIM), lambda t: (0, 0)),
            pl.BlockSpec((MEM_HEI, MEM_WID), lambda t: (0, 0)),
            pl.BlockSpec((MEM_WID, MEM_HEI), lambda t: (0, 0)),
            pl.BlockSpec((INPUT_DIM + READ_VEC_DIM, HIDDEN_DIM), lambda t: (0, 0)),
            pl.BlockSpec((1, HIDDEN_DIM), lambda t: (0, 0)),
            pl.BlockSpec((HIDDEN_DIM, READ_VEC_DIM), lambda t: (0, 0)),
            pl.BlockSpec((1, READ_VEC_DIM), lambda t: (0, 0)),
            pl.BlockSpec((HIDDEN_DIM + READ_VEC_DIM, OUTPUT_DIM), lambda t: (0, 0)),
            pl.BlockSpec((1, OUTPUT_DIM), lambda t: (0, 0)),
        ],
        out_specs=pl.BlockSpec((None, BATCH, SLAB_LANES), lambda t: (t, 0, 0)),
        scratch_shapes=[pltpu.VMEM((BATCH, READ_VEC_DIM), jnp.float32)],
    )

    slab = pl.pallas_call(
        circuit_kernel,
        out_shape=jax.ShapeDtypeStruct((T, BATCH, SLAB_LANES), jnp.float32),
        grid_spec=grid_spec,
        compiler_params=pltpu.CompilerParams(
            dimension_semantics=("arbitrary",)),   # sequential recurrence
    )(x_seq, read_vec0, memory, mem_t, w_c, b_c, w_k, b_k, w_o, b_o)

    outs = slab[:, :, :OUTPUT_DIM]                                   # (T, B, OUT)
    new_rv = slab[-1, :, OUTPUT_DIM:OUTPUT_DIM + READ_VEC_DIM]       # (B, R*W)
    return outs, new_rv


def circuit_forward(x, read_vec, memory, params):
    """Single-step forward, matching the PyTorch module's .view(1, B, output_dim)."""
    outs, new_rv = circuit_forward_seq(x[None], read_vec, memory, params)
    return outs[0].reshape(1, BATCH, OUTPUT_DIM), new_rv


def init_params(key):
    ks = jax.random.split(key, 8)
    scale = 0.1
    w_ci = scale * jax.random.normal(ks[0], (INPUT_DIM, HIDDEN_DIM), jnp.float32)
    w_cr = scale * jax.random.normal(ks[1], (READ_VEC_DIM, HIDDEN_DIM), jnp.float32)
    b_c = scale * jax.random.normal(ks[2], (1, HIDDEN_DIM), jnp.float32)
    w_k = scale * jax.random.normal(ks[3], (HIDDEN_DIM, READ_VEC_DIM), jnp.float32)
    b_k = scale * jax.random.normal(ks[4], (1, READ_VEC_DIM), jnp.float32)
    w_oh = scale * jax.random.normal(ks[5], (HIDDEN_DIM, OUTPUT_DIM), jnp.float32)
    w_or = scale * jax.random.normal(ks[6], (READ_VEC_DIM, OUTPUT_DIM), jnp.float32)
    b_o = scale * jax.random.normal(ks[7], (1, OUTPUT_DIM), jnp.float32)
    return (w_ci, w_cr, b_c, w_k, b_k, w_oh, w_or, b_o)


# ------------------------- pure-JAX reference --------------------------------
def _circuit_step_ref(x, rv, mem, params):
    w_ci, w_cr, b_c, w_k, b_k, w_oh, w_or, b_o = params
    hidden = jnp.tanh(x @ w_ci + rv @ w_cr + b_c)
    keys = hidden @ w_k + b_k
    reads = []
    for h in range(NUM_READ_HEADS):
        kh = keys[:, h * MEM_WID:(h + 1) * MEM_WID]
        w = jax.nn.softmax(kh @ mem.T, axis=-1)
        reads.append(w @ mem)
    read_vec = jnp.concatenate(reads, axis=1)
    logits = hidden @ w_oh + read_vec @ w_or + b_o
    out = jax.nn.sigmoid(jnp.clip(logits, -CLIP_VALUE, CLIP_VALUE))
    return out, read_vec


def _circuit_seq_ref(x_seq, rv0, mem, params):
    outs, rv = [], rv0
    for t in range(x_seq.shape[0]):
        out, rv = _circuit_step_ref(x_seq[t], rv, mem, params)
        outs.append(out)
    return jnp.stack(outs), rv


if __name__ == "__main__":
    key = jax.random.PRNGKey(0)
    k_in, k_mem, k_par = jax.random.split(key, 3)

    T = 8
    x_seq = jax.random.normal(k_in, (T, BATCH, INPUT_DIM), jnp.float32)
    # _reset(): read_vec initialized to 1e-6 (torch.zeros(...).fill_(1e-06))
    read_vec0 = jnp.full((BATCH, READ_VEC_DIM), 1e-6, jnp.float32)
    # external memory state (random so the accessor read is non-trivial)
    memory = jax.random.normal(k_mem, (MEM_HEI, MEM_WID), jnp.float32)
    params = init_params(k_par)

    # Rolled recurrence: T forward steps in one pallas_call.
    outs, new_rv = circuit_forward_seq(x_seq, read_vec0, memory, params)
    jax.block_until_ready((outs, new_rv))

    # Single-step call (exact module output shape).
    out1, rv1 = circuit_forward(x_seq[0], read_vec0, memory, params)
    jax.block_until_ready((out1, rv1))

    # Checks
    ref_outs, ref_rv = _circuit_seq_ref(x_seq, read_vec0, memory, params)
    assert outs.shape == (T, BATCH, OUTPUT_DIM)
    assert new_rv.shape == (BATCH, READ_VEC_DIM)
    assert out1.shape == (1, BATCH, OUTPUT_DIM)
    assert bool(jnp.all(outs >= 0.0)) and bool(jnp.all(outs <= 1.0))
    assert bool(jnp.allclose(outs, ref_outs, atol=1e-2, rtol=1e-2))
    assert bool(jnp.allclose(new_rv, ref_rv, atol=1e-2, rtol=1e-2))
    assert bool(jnp.allclose(out1[0], ref_outs[0], atol=1e-2, rtol=1e-2))
    print("KERNEL_OK")
</pallas_src>

<mosaic_0001>
module attributes {stable_mosaic.version = 11 : i64} {
  func.func @circuit_kernel(%arg0: i32, %arg1: memref<1x4x16xf32, #tpu.memory_space<vmem>>, %arg2: memref<4x32xf32, #tpu.memory_space<vmem>>, %arg3: memref<8x16xf32, #tpu.memory_space<vmem>>, %arg4: memref<16x8xf32, #tpu.memory_space<vmem>>, %arg5: memref<48x32xf32, #tpu.memory_space<vmem>>, %arg6: memref<1x32xf32, #tpu.memory_space<vmem>>, %arg7: memref<32x32xf32, #tpu.memory_space<vmem>>, %arg8: memref<1x32xf32, #tpu.memory_space<vmem>>, %arg9: memref<64x8xf32, #tpu.memory_space<vmem>>, %arg10: memref<1x8xf32, #tpu.memory_space<vmem>>, %arg11: memref<1x4x128xf32, #tpu.memory_space<vmem>>, %arg12: memref<4x32xf32, #tpu.memory_space<vmem>>) attributes {dimension_semantics = [#tpu.dimension_semantics<arbitrary>], iteration_bounds = array<i64: 8>, scalar_prefetch = 0 : i64, scratch_operands = 1 : i64, tpu.core_type = #tpu.core_type<tc>, window_params = [{transform_indices = @transform_0, window_bounds = array<i64: 1, 4, 16>}, {pipeline_mode = #tpu.pipeline_mode<synchronous>, transform_indices = @transform_1, window_bounds = array<i64: 4, 32>}, {pipeline_mode = #tpu.pipeline_mode<synchronous>, transform_indices = @transform_2, window_bounds = array<i64: 8, 16>}, {pipeline_mode = #tpu.pipeline_mode<synchronous>, transform_indices = @transform_3, window_bounds = array<i64: 16, 8>}, {pipeline_mode = #tpu.pipeline_mode<synchronous>, transform_indices = @transform_4, window_bounds = array<i64: 48, 32>}, {pipeline_mode = #tpu.pipeline_mode<synchronous>, transform_indices = @transform_5, window_bounds = array<i64: 1, 32>}, {pipeline_mode = #tpu.pipeline_mode<synchronous>, transform_indices = @transform_6, window_bounds = array<i64: 32, 32>}, {pipeline_mode = #tpu.pipeline_mode<synchronous>, transform_indices = @transform_7, window_bounds = array<i64: 1, 32>}, {pipeline_mode = #tpu.pipeline_mode<synchronous>, transform_indices = @transform_8, window_bounds = array<i64: 64, 8>}, {pipeline_mode = #tpu.pipeline_mode<synchronous>, transform_indices = @transform_9, window_bounds = array<i64: 1, 8>}, {transform_indices = @transform_10, window_bounds = array<i64: 1, 4, 128>}]} {
    %c0_i32 = arith.constant 0 : i32
    %0 = arith.cmpi eq, %arg0, %c0_i32 : i32
    %1 = arith.extui %0 : i1 to i32
    %c0_i32_0 = arith.constant 0 : i32
    %2 = arith.cmpi ne, %1, %c0_i32_0 : i32
    scf.if %2 {
      %c0_41 = arith.constant 0 : index
      %c0_42 = arith.constant 0 : index
      %64 = vector.load %arg2[%c0_41, %c0_42] : memref<4x32xf32, #tpu.memory_space<vmem>>, vector<4x32xf32>
      %c0_43 = arith.constant 0 : index
      %c0_44 = arith.constant 0 : index
      %65 = vector.load %arg12[%c0_43, %c0_44] : memref<4x32xf32, #tpu.memory_space<vmem>>, vector<4x32xf32>
      tpu.vector_store %arg12[%c0_43, %c0_44], %64 {strides = array<i32>} : memref<4x32xf32, #tpu.memory_space<vmem>>, vector<4x32xf32>,
    } else {
    }
    %c0 = arith.constant 0 : index
    %c0_1 = arith.constant 0 : index
    %c0_2 = arith.constant 0 : index
    %3 = vector.load %arg1[%c0, %c0_1, %c0_2] : memref<1x4x16xf32, #tpu.memory_space<vmem>>, vector<1x4x16xf32>
    %4 = vector.shape_cast %3 : vector<1x4x16xf32> to vector<4x16xf32>
    %c0_3 = arith.constant 0 : index
    %c0_4 = arith.constant 0 : index
    %5 = vector.load %arg12[%c0_3, %c0_4] : memref<4x32xf32, #tpu.memory_space<vmem>>, vector<4x32xf32>
    %c0_5 = arith.constant 0 : index
    %c0_6 = arith.constant 0 : index
    %6 = vector.load %arg3[%c0_5, %c0_6] : memref<8x16xf32, #tpu.memory_space<vmem>>, vector<8x16xf32>
    %c0_7 = arith.constant 0 : index
    %c0_8 = arith.constant 0 : index
    %7 = vector.load %arg4[%c0_7, %c0_8] : memref<16x8xf32, #tpu.memory_space<vmem>>, vector<16x8xf32>
    %8 = tpu.concatenate %4, %5 in 1 : vector<4x16xf32>, vector<4x32xf32> -> vector<4x48xf32>
    %c0_9 = arith.constant 0 : index
    %c0_10 = arith.constant 0 : index
    %9 = vector.load %arg5[%c0_9, %c0_10] : memref<48x32xf32, #tpu.memory_space<vmem>>, vector<48x32xf32>
    %cst = arith.constant dense<0.000000e+00> : vector<4x32xf32>
    %10 = tpu.matmul %8, %9, %cst {dimension_numbers = #tpu.dot_dimension_numbers<[1], [0], [0], [1], [0, 0, 1, 1], [], []>} : vector<4x48xf32>, vector<48x32xf32>, vector<4x32xf32> -> vector<4x32xf32>
    %c0_11 = arith.constant 0 : index
    %c0_12 = arith.constant 0 : index
    %11 = vector.load %arg6[%c0_11, %c0_12] : memref<1x32xf32, #tpu.memory_space<vmem>>, vector<1x32xf32>
    %12 = vector.broadcast %11 : vector<1x32xf32> to vector<4x32xf32>
    %13 = arith.addf %10, %12 : vector<4x32xf32>
    %14 = math.tanh %13 : vector<4x32xf32>
    %c0_13 = arith.constant 0 : index
    %c0_14 = arith.constant 0 : index
    %15 = vector.load %arg7[%c0_13, %c0_14] : memref<32x32xf32, #tpu.memory_space<vmem>>, vector<32x32xf32>
    %cst_15 = arith.constant dense<0.000000e+00> : vector<4x32xf32>
    %16 = tpu.matmul %14, %15, %cst_15 {dimension_numbers = #tpu.dot_dimension_numbers<[1], [0], [0], [1], [0, 0, 1, 1], [], []>} : vector<4x32xf32>, vector<32x32xf32>, vector<4x32xf32> -> vector<4x32xf32>
    %c0_16 = arith.constant 0 : index
    %c0_17 = arith.constant 0 : index
    %17 = vector.load %arg8[%c0_16, %c0_17] : memref<1x32xf32, #tpu.memory_space<vmem>>, vector<1x32xf32>
    %18 = vector.broadcast %17 : vector<1x32xf32> to vector<4x32xf32>
    %19 = arith.addf %16, %18 : vector<4x32xf32>
    %20 = vector.extract_strided_slice %19 {offsets = [0, 0], sizes = [4, 16], strides = [1, 1]} : vector<4x32xf32> to vector<4x16xf32>
    %21 = vector.extract_strided_slice %19 {offsets = [0, 16], sizes = [4, 16], strides = [1, 1]} : vector<4x32xf32> to vector<4x16xf32>
    %22 = tpu.concatenate %20, %21 in 0 : vector<4x16xf32>, vector<4x16xf32> -> vector<8x16xf32>
    %cst_18 = arith.constant dense<0.000000e+00> : vector<8x8xf32>
    %23 = tpu.matmul %22, %7, %cst_18 {dimension_numbers = #tpu.dot_dimension_numbers<[1], [0], [0], [1], [0, 0, 1, 1], [], []>} : vector<8x16xf32>, vector<16x8xf32>, vector<8x8xf32> -> vector<8x8xf32>
    %cst_19 = arith.constant dense<0xFF800000> : vector<8xf32>
    %24 = vector.multi_reduction <maximumf>, %23, %cst_19 [1] : vector<8x8xf32> to vector<8xf32>
    %25 = vector.shape_cast %24 : vector<8xf32> to vector<8x1xf32>
    %26 = vector.broadcast %25 : vector<8x1xf32> to vector<8x8xf32>
    %27 = arith.subf %23, %26 : vector<8x8xf32>
    %28 = math.exp %27 : vector<8x8xf32>
    %cst_20 = arith.constant dense<0.000000e+00> : vector<8xf32>
    %29 = vector.multi_reduction <add>, %28, %cst_20 [1] : vector<8x8xf32> to vector<8xf32>
    %30 = vector.shape_cast %29 : vector<8xf32> to vector<8x1xf32>
    %31 = tpu.reciprocal %30 {approx = true} : vector<8x1xf32> -> vector<8x1xf32>
    %32 = vector.broadcast %31 : vector<8x1xf32> to vector<8x8xf32>
    %33 = arith.mulf %28, %32 : vector<8x8xf32>
    %cst_21 = arith.constant dense<0.000000e+00> : vector<8x16xf32>
    %34 = tpu.matmul %33, %6, %cst_21 {dimension_numbers = #tpu.dot_dimension_numbers<[1], [0], [0], [1], [0, 0, 1, 1], [], []>} : vector<8x8xf32>, vector<8x16xf32>, vector<8x16xf32> -> vector<8x16xf32>
    %35 = vector.extract_strided_slice %34 {offsets = [0, 0], sizes = [4, 16], strides = [1, 1]} : vector<8x16xf32> to vector<4x16xf32>
    %36 = vector.extract_strided_slice %34 {offsets = [4, 0], sizes = [4, 16], strides = [1, 1]} : vector<8x16xf32> to vector<4x16xf32>
    %37 = tpu.concatenate %35, %36 in 1 : vector<4x16xf32>, vector<4x16xf32> -> vector<4x32xf32>
    %c0_22 = arith.constant 0 : index
    %c0_23 = arith.constant 0 : index
    %38 = vector.load %arg12[%c0_22, %c0_23] : memref<4x32xf32, #tpu.memory_space<vmem>>, vector<4x32xf32>
    tpu.vector_store %arg12[%c0_22, %c0_23], %37 {strides = array<i32>} : memref<4x32xf32, #tpu.memory_space<vmem>>, vector<4x32xf32>,
    %39 = tpu.concatenate %14, %37 in 1 : vector<4x32xf32>, vector<4x32xf32> -> vector<4x64xf32>
    %c0_24 = arith.constant 0 : index
    %c0_25 = arith.constant 0 : index
    %40 = vector.load %arg9[%c0_24, %c0_25] : memref<64x8xf32, #tpu.memory_space<vmem>>, vector<64x8xf32>
    %cst_26 = arith.constant dense<0.000000e+00> : vector<4x8xf32>
    %41 = tpu.matmul %39, %40, %cst_26 {dimension_numbers = #tpu.dot_dimension_numbers<[1], [0], [0], [1], [0, 0, 1, 1], [], []>} : vector<4x64xf32>, vector<64x8xf32>, vector<4x8xf32> -> vector<4x8xf32>
    %c0_27 = arith.constant 0 : index
    %c0_28 = arith.constant 0 : index
    %42 = vector.load %arg10[%c0_27, %c0_28] : memref<1x8xf32, #tpu.memory_space<vmem>>, vector<1x8xf32>
    %43 = vector.broadcast %42 : vector<1x8xf32> to vector<4x8xf32>
    %44 = arith.addf %41, %43 : vector<4x8xf32>
    %cst_29 = arith.constant -2.000000e+01 : f32
    %cst_30 = arith.constant 2.000000e+01 : f32
    %45 = vector.broadcast %cst_29 : f32 to vector<4x8xf32>
    %46 = arith.maximumf %45, %44 : vector<4x8xf32>
    %47 = vector.broadcast %cst_30 : f32 to vector<4x8xf32>
    %48 = arith.minimumf %47, %46 : vector<4x8xf32>
    %49 = arith.negf %48 : vector<4x8xf32>
    %50 = math.exp %49 : vector<4x8xf32>
    %cst_31 = arith.constant 1.000000e+00 : f32
    %51 = vector.broadcast %cst_31 : f32 to vector<4x8xf32>
    %52 = arith.addf %51, %50 : vector<4x8xf32>
    %53 = arith.divf %51, %52 : vector<4x8xf32>
    %cst_32 = arith.constant 0.000000e+00 : f32
    %54 = vector.broadcast %cst_32 : f32 to vector<4x128xf32>
    %c0_33 = arith.constant 0 : index
    %c0_34 = arith.constant 0 : index
    %c0_35 = arith.constant 0 : index
    %55 = vector.load %arg11[%c0_33, %c0_34, %c0_35] : memref<1x4x128xf32, #tpu.memory_space<vmem>>, vector<1x4x128xf32>
    %56 = vector.shape_cast %55 : vector<1x4x128xf32> to vector<4x128xf32>
    %57 = vector.shape_cast %54 : vector<4x128xf32> to vector<1x4x128xf32>
    tpu.vector_store %arg11[%c0_33, %c0_34, %c0_35], %57 {strides = array<i32>} : memref<1x4x128xf32, #tpu.memory_space<vmem>>, vector<1x4x128xf32>,
    %c0_36 = arith.constant 0 : index
    %c0_37 = arith.constant 0 : index
    %c0_38 = arith.constant 0 : index
    %58 = vector.load %arg11[%c0_36, %c0_37, %c0_38] : memref<1x4x128xf32, #tpu.memory_space<vmem>>, vector<1x4x8xf32>
    %59 = vector.shape_cast %58 : vector<1x4x8xf32> to vector<4x8xf32>
    %60 = vector.shape_cast %53 : vector<4x8xf32> to vector<1x4x8xf32>
    tpu.vector_store %arg11[%c0_36, %c0_37, %c0_38], %60 {strides = array<i32>} : memref<1x4x128xf32, #tpu.memory_space<vmem>>, vector<1x4x8xf32>,
    %c0_39 = arith.constant 0 : index
    %c0_40 = arith.constant 0 : index
    %c8 = arith.constant 8 : index
    %61 = vector.load %arg11[%c0_39, %c0_40, %c8] : memref<1x4x128xf32, #tpu.memory_space<vmem>>, vector<1x4x32xf32>
    %62 = vector.shape_cast %61 : vector<1x4x32xf32> to vector<4x32xf32>
    %63 = vector.shape_cast %37 : vector<4x32xf32> to vector<1x4x32xf32>
    tpu.vector_store %arg11[%c0_39, %c0_40, %c8], %63 {strides = array<i32>} : memref<1x4x128xf32, #tpu.memory_space<vmem>>, vector<1x4x32xf32>,
    return
  }
  func.func @transform_0(%arg0: i32) -> (i32, i32, i32) {
    %c0_i32 = arith.constant 0 : i32
    %c0_i32_0 = arith.constant 0 : i32
    %c0_i32_1 = arith.constant 0 : i32
    return %arg0, %c0_i32, %c0_i32_0 : i32, i32, i32
  }
  func.func @transform_1(%arg0: i32) -> (i32, i32) {
    %c0_i32 = arith.constant 0 : i32
    %c0_i32_0 = arith.constant 0 : i32
    %c0_i32_1 = arith.constant 0 : i32
    return %c0_i32, %c0_i32_0 : i32, i32
  }
  func.func @transform_2(%arg0: i32) -> (i32, i32) {
    %c0_i32 = arith.constant 0 : i32
    %c0_i32_0 = arith.constant 0 : i32
    %c0_i32_1 = arith.constant 0 : i32
    return %c0_i32, %c0_i32_0 : i32, i32
  }
  func.func @transform_3(%arg0: i32) -> (i32, i32) {
    %c0_i32 = arith.constant 0 : i32
    %c0_i32_0 = arith.constant 0 : i32
    %c0_i32_1 = arith.constant 0 : i32
    return %c0_i32, %c0_i32_0 : i32, i32
  }
  func.func @transform_4(%arg0: i32) -> (i32, i32) {
    %c0_i32 = arith.constant 0 : i32
    %c0_i32_0 = arith.constant 0 : i32
    %c0_i32_1 = arith.constant 0 : i32
    return %c0_i32, %c0_i32_0 : i32, i32
  }
  func.func @transform_5(%arg0: i32) -> (i32, i32) {
    %c0_i32 = arith.constant 0 : i32
    %c0_i32_0 = arith.constant 0 : i32
    %c0_i32_1 = arith.constant 0 : i32
    return %c0_i32, %c0_i32_0 : i32, i32
  }
  func.func @transform_6(%arg0: i32) -> (i32, i32) {
    %c0_i32 = arith.constant 0 : i32
    %c0_i32_0 = arith.constant 0 : i32
    %c0_i32_1 = arith.constant 0 : i32
    return %c0_i32, %c0_i32_0 : i32, i32
  }
  func.func @transform_7(%arg0: i32) -> (i32, i32) {
    %c0_i32 = arith.constant 0 : i32
    %c0_i32_0 = arith.constant 0 : i32
    %c0_i32_1 = arith.constant 0 : i32
    return %c0_i32, %c0_i32_0 : i32, i32
  }
  func.func @transform_8(%arg0: i32) -> (i32, i32) {
    %c0_i32 = arith.constant 0 : i32
    %c0_i32_0 = arith.constant 0 : i32
    %c0_i32_1 = arith.constant 0 : i32
    return %c0_i32, %c0_i32_0 : i32, i32
  }
  func.func @transform_9(%arg0: i32) -> (i32, i32) {
    %c0_i32 = arith.constant 0 : i32
    %c0_i32_0 = arith.constant 0 : i32
    %c0_i32_1 = arith.constant 0 : i32
    return %c0_i32, %c0_i32_0 : i32, i32
  }
  func.func @transform_10(%arg0: i32) -> (i32, i32, i32) {
    %c0_i32 = arith.constant 0 : i32
    %c0_i32_0 = arith.constant 0 : i32
    %c0_i32_1 = arith.constant 0 : i32
    return %arg0, %c0_i32, %c0_i32_0 : i32, i32, i32
  }
}

</mosaic_0001>

<bundles_post_ra>
// kernel: circuit_forward_seq.1
= control target key start
LH: loop header
LB: loop body
LE: loop exit
PB: predicated region body
PF: predicated region fallthrough
CT: control target
= control target key end

     0   :  { %s747_s13 = smov 0   ;;  %s858_s0 = inlined_call_operand.vmem [shape: f32[8,4,16], index: 0, kind: input, shape index: {}]   ;;  %s859_s1 = inlined_call_operand.vmem [shape: f32[4,32], index: 1, kind: input, shape index: {}]   ;;  %s860_s2 = inlined_call_operand.vmem [shape: f32[8,16], index: 2, kind: input, shape index: {}]   ;;  %s861_s3 = inlined_call_operand.vmem [shape: f32[16,8], index: 3, kind: input, shape index: {}]   ;;  %s862_s4 = inlined_call_operand.vmem [shape: f32[48,32], index: 4, kind: input, shape index: {}]   ;;  %s863_s5 = inlined_call_operand.vmem [shape: f32[1,32], index: 5, kind: input, shape index: {}]   ;;  %s864_s6 = inlined_call_operand.vmem [shape: f32[32,32], index: 6, kind: input, shape index: {}]   ;;  %s865_s7 = inlined_call_operand.vmem [shape: f32[1,32], index: 7, kind: input, shape index: {}]   ;;  %s866_s8 = inlined_call_operand.vmem [shape: f32[64,8], index: 8, kind: input, shape index: {}]   ;;  %s867_s9 = inlined_call_operand.vmem [shape: f32[1,8], index: 9, kind: input, shape index: {}]   ;;  %s868_s10 = inlined_call_operand.vmem [shape: f32[8,4,128], index: 10, kind: output, shape index: {}]  }
   0x1 LB: > { %s636_s14 = sadd.s32 4294967295, %s685_s13   ;;  %p640_p0 = scmp.ge.s32.totalorder %s685_s13, 1  ;;  %s685_s13 = sphi %s747_s13, %s20_s13  }
   0x2   : > { %p311_p1 = scmp.lt.s32.totalorder %s685_s13, 9 }
   0x4   : > { %p312_p2 = pnand %p640_p0, %p311_p1 }
   0x5   : > { %p347_p3 = scmp.lt.s32.totalorder (!%p312_p2), %s636_s14, 7  ;;  %p643_p4 = scmp.ne.s32.totalorder (!%p312_p2), %s636_s14, 0 }
   0x6   : > { %315 = sbr.rel (%p312_p2) target bundleno = 1393 (0x571), region = 60 }
   0xb   : > { %s348_s15 = scalar_select %p347_p3, %s636_s14, 7 }
   0xc   : > { %358 = sbr.rel (%p643_p4) target bundleno = 19 (0x13), region = 64 }
   0xd   : > { %s641_s16 = sshll.u32 %s348_s15, 2 }
   0xe   : > { %s350_s19 = scalar_lea.vmem %s858_s0, %s641_s16  ;;  %s761_s22 = scalar_lea.vmem %s868_s10, %s641_s16 }
  0x11   : > { %v359_v0 = vld [vmem:[%s859_s1] sm:$0xf]  ;;  %vm360_vm0 = vcmask 257024  }
  0x12   : > { %361 = vst.msk [vmem:[#allocation2] sm:$0xf] %vm360_vm0, %v359_v0 }
  0x13 PF: > { %v378_v2 = vld [vmem:[%s862_s4 + $0x28] sm:$0xff]  ;;  %v377_v3 = vld [vmem:[%s862_s4 + $0x20] sm:$0xff]  ;;  %s687_s29 = smov 16   ;;  %v376_v4 = vld [vmem:[%s862_s4 + $0x18] sm:$0xff]  ;;  %vm371_vm1 = vcmask 130048   ;;  %vm383_vm2 = vcmask 392192  }
  0x14   : > { %397 = vmatpush.msra.mxu0 %v378_v2  ;;  %v375_v5 = vld [vmem:[%s862_s4 + $0x10] sm:$0xff]  ;;  %v374_v6 = vld [vmem:[%s862_s4 + $0x8] sm:$0xff]  ;;  %v373_v7 = vld [vmem:[%s862_s4] sm:$0xff]  ;;  %vm416_vm3 = vcmask 261120   ;;  %s688_s16 = smov 112   ;;  %vm445_vm4 = vcmask 1043456  }
  0x15   : > { %v362_v8 = vld [vmem:[%s350_s19] sm:$0xf]  ;;  %v411_v11 = vld [vmem:[%s864_s6 + $0x18] sm:$0xff]  ;;  %v410_v12 = vld [vmem:[%s864_s6 + $0x10] sm:$0xff]  ;;  %vm470_vm5 = vcmask 64512   ;;  %vm511_vm6 = vcmask 257024  }
  0x16   : > { %398 = vmatpush.msra.mxu0 %v377_v3  ;;  %432 = vmatpush.msra.mxu1 %v411_v11  ;;  %v409_v13 = vld [vmem:[%s864_s6 + $0x8] sm:$0xff]  ;;  %v408_v14 = vld [vmem:[%s864_s6] sm:$0xff]  ;;  %v525_v40 = vld [vmem:[%s866_s8 + $0x38] sm:$0xff]  ;;  %s689_s17 = smov 8   ;;  %s690_s18 = smov 32   ;;  %vm530_vm7 = vcmask 523264  }
  0x17   : > { %v666_v15 = vld [vmem:[%s863_s5] ss:$0 sm:$0xff]  ;;  %v366_v19 = vld [vmem:[%s861_s3 + $0x8] sm:$0xff]  ;;  %v524_v41 = vld [vmem:[%s866_s8 + $0x30] sm:$0xff]  ;;  %542 = vmatpush.msra.mxu3 %v525_v40  ;;  %v691_v54 = vmov 0.0   ;;  %vm576_vm11 = vcmask 60416  }
  0x18   : > { %399 = vmatpush.msra.mxu0 %v376_v4  ;;  %433 = vmatpush.msra.mxu1 %v410_v12  ;;  %v667_v20 = vld [vmem:[%s865_s7] ss:$0 sm:$0xff]  ;;  %v523_v42 = vld [vmem:[%s866_s8 + $0x28] sm:$0xff]  ;;  %v521_v44 = vld [vmem:[%s866_s8 + $0x18] sm:$0xff]  ;;  %575 = vst [vmem:[%s761_s22] sm:$0xf] %v691_v54  ;;  %vm581_vm13 = vcmask 322624  }
  0x19   : > { %v363_v1 = vld [vmem:[#allocation2] sm:$0xf]  ;;  %464 = vmatpush.msra.mxu2 %v366_v19  ;;  %543 = vmatpush.msra.mxu3 %v524_v41  ;;  %v520_v45 = vld [vmem:[%s866_s8 + $0x10] sm:$0xff]  ;;  %v519_v46 = vld [vmem:[%s866_s8 + $0x8] sm:$0xff] }
  0x1a   : > { %368 = vrot.lane.b32.xlu0 %v363_v1, %s687_s29  ;;  %400 = vmatpush.msra.mxu0 %v375_v5  ;;  %v365_v24 = vld [vmem:[%s861_s3] sm:$0xff] }
  0x1b   : > { %434 = vmatpush.msra.mxu1 %v409_v13  ;;  %465 = vmatpush.msra.mxu2 %v365_v24  ;;  %v364_v34 = vld [vmem:[%s860_s2] sm:$0xff] }
  0x1c   : > { %401 = vmatpush.msra.mxu0 %v374_v6  ;;  %v522_v43 = vld [vmem:[%s866_s8 + $0x20] sm:$0xff]  ;;  %544 = vmatpush.msra.mxu3 %v523_v42 }
  0x1d   : > { %435 = vmatpush.msra.mxu1 %v408_v14  ;;  %500 = vmatpush.msrb.mxu2 %v364_v34  ;;  %v518_v49 = vld [vmem:[%s866_s8] sm:$0xff] }
  0x1e   : > { %402 = vmatpush.msra.mxu0 %v373_v7  ;;  %545 = vmatpush.msra.mxu3 %v522_v43  ;;  %v668_v52 = vld [vmem:[%s867_s9] ss:$0 sm:$0xff] }
  0x20   : > { %546 = vmatpush.msra.mxu3 %v521_v44 }
  0x22   : > { %547 = vmatpush.msra.mxu3 %v520_v45 }
  0x24   : > { %548 = vmatpush.msra.mxu3 %v519_v46 }
  0x26   : > { %549 = vmatpush.msra.mxu3 %v518_v49 }
  0x8c   : > { %v369_v9 = vpop.permute.xlu0 %368 }
  0x8d   : > { %v372_v10 = vsel %vm371_vm1, %v362_v8, %v369_v9 }
  0x8e   : > { %644 = vmatmul.msk.f32.vlgmr.msra.gmra.mxu0 %vm383_vm2, %v372_v10 }
 0x10b   : > { %v404_v16 = vpop.f32.mrf.mxu0 }
 0x10c   : > { %v405_v17 = vadd.f32 %v666_v15, %v404_v16 }
 0x10e   : > { %669 = vtanh.f32 %v405_v17 }
 0x114   : > { %v801_v18 = vpop.eup %669 }
 0x115   : > { %645 = vmatmul.msk.f32.vlgmr.msra.gmra.mxu1 %vm416_vm3, %v801_v18 }
 0x192   : > { %v437_v21 = vpop.f32.mrf.mxu1 }
 0x193   : > { %v438_v22 = vadd.f32 %v667_v20, %v437_v21 }
 0x195   : > { %v441_v23 = vrot.slane %v438_v22, 4 }
 0x197   : > { %442 = vrot.lane.b32.xlu0 %v441_v23, %s688_s16 }
 0x209   : > { %v443_v25 = vpop.permute.xlu0 %442 }
 0x20a   : > { %v446_v26 = vsel %vm445_vm4, %v438_v22, %v443_v25 }
 0x20b   : > { %646 = vmatmul.msk.f32.vlgmr.msra.gmra.mxu2 %vm371_vm1, %v446_v26 }
 0x28e   : > { %v467_v27 = vpop.f32.mrf.mxu2 }
 0x28f   : > { %v471_v28 = vsel %vm470_vm5, %v467_v27, -inf }
 0x290   : > { %472 = vmax.xlane.f32.xlu1 %v471_v28 }
 0x303   : > { %v473_v29 = vpop.xlane.xlu1 %472 }
 0x304   : > { %v474_v30 = vsub.f32 %v467_v27, %v473_v29 }
 0x306   : > { %v475_v31 = vmul.f32 1.442695, %v474_v30 }
 0x308   : > { %671 = vpow2.f32 %v475_v31 }
 0x30e   : > { %v672_v32 = vpop.eup %671 }
 0x30f   : > { %v477_v33 = vsel %vm470_vm5, %v672_v32, 0.0 }
 0x310   : > { %478 = vadd.xlane.f32.xlu1 %v477_v33 }
 0x383   : > { %v479_v35 = vpop.xlane.xlu1 %478 }
 0x384   : > { %673 = vrcp.f32 %v479_v35 }
 0x38a   : > { %v674_v36 = vpop.eup %673 }
 0x38b   : > { %v481_v37 = vmul.f32 %v674_v36, %v672_v32 }
 0x38d   : > { %647 = vmatmul.msk.f32.vlgmr.msrb.gmra.mxu2 %vm470_vm5, %v481_v37 }
 0x410   : > { %v502_v38 = vpop.f32.mrf.mxu2 }
 0x411   : > { %v506_v39 = vrot.slane %v502_v38, 4 }
 0x413   : > { %507 = vrot.lane.b32.xlu2 %v506_v39, %s687_s29 }
 0x46d   : > { %v508_v47 = vpop.permute.xlu2 %507 }
 0x46e   : > { %v510_v48 = vsel %vm371_vm1, %v502_v38, %v508_v47 }
 0x46f   : > { %578 = vrot.lane.b32.xlu0 %v510_v48, %s689_s17  ;;  %512 = vst.msk [vmem:[#allocation2] sm:$0xf] %vm511_vm6, %v510_v48  ;;  %514 = vrot.lane.b32.xlu2 %v510_v48, %s690_s18 }
 0x4c9   : > { %v515_v50 = vpop.permute.xlu2 %514 }
 0x4ca   : > { %v517_v51 = vsel %vm416_vm3, %v801_v18, %v515_v50 }
 0x4cb   : > { %648 = vmatmul.msk.f32.vlgmr.msra.gmra.mxu3 %vm530_vm7, %v517_v51 }
 0x4e1   : > { %v579_v6 = vpop.permute.xlu0 %578 }
 0x54e   : > { %v551_v53 = vpop.f32.mrf.mxu3 }
 0x54f   : > { %v552_v55 = vadd.f32 %v668_v52, %v551_v53 }
 0x551   : > { %v649_v56 = vclamps-f32 %v552_v55, 20.0 }
 0x553   : > { %v650_v57 = vmul.f32 -1.442695, %v649_v56 }
 0x555   : > { %675 = vpow2.f32 %v650_v57 }
 0x55b   : > { %v676_v58 = vpop.eup %675 }
 0x55c   : > { %v559_v59 = vadd.f32 1.0, %v676_v58 }
 0x55e   : > { %677 = vrcp.f32 %v559_v59  ;;  %v571_v63 = vand.u32 2147483648, %v559_v59  ;;  %v569_v1 = vand.u32 2147483647, %v559_v59  ;;  %vm565_vm9 = vweird.f32 %v559_v59 }
 0x560   : > { %v572_v3 = vor.u32 1.1754944e-38, %v571_v63  ;;  %vm570_vm12 = vcmp.eq.f32.partialorder %v569_v1, 8.507059e+37 }
 0x564   : > { %v678_v60 = vpop.eup %677 }
 0x565   : > { %v561_v61 = vmul.f32 %v678_v60, %v559_v59  ;;  %vm566_vm8 = vweird.f32 %v678_v60 }
 0x566   : > { %vm567_vm10 = vmor %vm565_vm9, %vm566_vm8 }
 0x567   : > { %v562_v62 = vsub.f32 1.0, %v561_v61 }
 0x569   : > { %v563_v0 = vmul.f32 %v678_v60, %v562_v62 }
 0x56b   : > { %v564_v2 = vadd.f32 %v678_v60, %v563_v0 }
 0x56d   : > { %v568_v4 = vsel %vm567_vm10, %v678_v60, %v564_v2 }
 0x56e   : > { %v573_v5 = vsel %vm570_vm12, %v572_v3, %v568_v4 }
 0x56f   : > { %577 = vst.msk [vmem:[%s761_s22] sm:$0xf] %vm576_vm11, %v573_v5 }
 0x570   : > { %582 = vst.msk [vmem:[%s761_s22] sm:$0xf] %vm581_vm13, %v579_v6 }
 0x571 PF: > { %s20_s13 = sadd.s32 1, %s685_s13  }
 0x572   : > { %p17_p5 = scmp.ge.s32.totalorder %s20_s13, 10  }
 0x574   :  { %19 = sbr.rel (!%p17_p5) target bundleno = 1 (0x1), region = 94 }

</bundles_post_ra>
